<compile_context>
chip_gen: v7x
topology: tpu7x:2x2x1
jax: 0.10.0
libtpu: 0.0.40
codegen_flags: <defaults>
</compile_context>

<pallas_src>
import functools

import jax
import jax.numpy as jnp
import numpy as np
from jax import lax
from jax.experimental import pallas as pl
from jax.experimental.pallas import tpu as pltpu


# --------------------------------------------------------------------------
# Pallas kernel: fused  [h|g] = P @ [Wh|Wg] + [bh|bg] ;  out = h * sigmoid(g)
# --------------------------------------------------------------------------
def _gated_conv_kernel(p_ref, w_ref, b_ref, o_ref):
    oc = o_ref.shape[-1]
    # One fused bf16 matmul for both branches, f32 accumulation on the MXU.
    acc = jnp.dot(p_ref[...], w_ref[...],
                  preferred_element_type=jnp.float32)            # [tm, 2*OC]
    acc = acc + b_ref[...]                                       # f32 bias
    h = acc[:, :oc]                                              # conv_h branch
    g = acc[:, oc:]                                              # conv_g branch
    # sigmoid(g) = 1 / (1 + exp(-g)); exp and reciprocal both land on the EUP
    # slot (free filler next to the MXU), gate math kept in f32 for v5e.
    gate = pl.reciprocal(1.0 + jnp.exp(-g), approx=True)
    o_ref[...] = (h * gate).astype(o_ref.dtype)


def _choose_row_tile(m, k, oc, *, target=512, min_tile=128,
                     vmem_budget=24 << 20):
    """Largest power-of-two row tile that (a) keeps the double-buffered
    footprint within a conservative VMEM budget (safe for v7x's 64 MiB) and
    (b) leaves >=8 grid steps so both v7x TensorCores get work."""
    def footprint(t):
        # 2x patch tile (bf16) + 2x output tile (f32) + resident fused W (bf16)
        return 2 * t * k * 2 + 2 * t * oc * 4 + k * (2 * oc) * 2 + 2 * oc * 4
    tm = target
    while tm > min_tile and (footprint(tm) > vmem_budget
                             or pl.cdiv(m, tm) < 8):
        tm //= 2
    return max(tm, min_tile)


def _gated_matmul(patches, w_fused, b_fused, oc, *, tm):
    """patches: [M, K] bf16; w_fused: [K, 2*OC] bf16; b_fused: [1, 2*OC] f32."""
    m, k = patches.shape
    oc2 = w_fused.shape[1]
    grid = (pl.cdiv(m, tm),)

    # Advisory cost estimate for XLA scheduling around the custom call.
    cost = pl.CostEstimate(
        flops=2 * m * k * oc2,
        transcendentals=2 * m * oc,
        bytes_accessed=(m * k * 2 + k * oc2 * 2 + oc2 * 4 + m * oc * 4),
    )
    # Explicit VMEM limit (> the 16/32 MiB scoped defaults, <= v7x physical).
    needed = 2 * (2 * tm * k * 2 + 2 * tm * oc * 4) + k * oc2 * 2
    vmem_limit = int(min(max(needed + (4 << 20), 32 << 20), 64 << 20))

    return pl.pallas_call(
        _gated_conv_kernel,
        out_shape=jax.ShapeDtypeStruct((m, oc), jnp.float32),
        grid_spec=pltpu.PrefetchScalarGridSpec(
            num_scalar_prefetch=0,
            grid=grid,
            in_specs=[
                pl.BlockSpec((tm, k), lambda i: (i, 0)),    # patch row tile (bf16)
                pl.BlockSpec((k, oc2), lambda i: (0, 0)),   # fused Wh|Wg (resident)
                pl.BlockSpec((1, oc2), lambda i: (0, 0)),   # fused bias (f32)
            ],
            out_specs=pl.BlockSpec((tm, oc), lambda i: (i, 0)),
        ),
        compiler_params=pltpu.CompilerParams(
            dimension_semantics=("parallel",),
            vmem_limit_bytes=vmem_limit,
        ),
        cost_estimate=cost,
    )(patches, w_fused, b_fused)


# --------------------------------------------------------------------------
# im2col glue (plain JAX) + wrapper matching GatedConv2d.forward semantics
# --------------------------------------------------------------------------
def _im2col(x, kh, kw, stride, padding, dilation):
    """x: [N, C, H, W] -> patches [N*OH*OW, C*kh*kw] ordered (C, KH, KW)."""
    n, c, h, w = x.shape
    xp = jnp.pad(x, ((0, 0), (0, 0), (padding, padding), (padding, padding)))
    hp, wp = h + 2 * padding, w + 2 * padding
    oh = (hp - dilation * (kh - 1) - 1) // stride + 1
    ow = (wp - dilation * (kw - 1) - 1) // stride + 1

    slices = []
    for ki in range(kh):
        for kj in range(kw):
            i0 = ki * dilation
            j0 = kj * dilation
            sl = lax.slice(
                xp,
                (0, 0, i0, j0),
                (n, c, i0 + (oh - 1) * stride + 1, j0 + (ow - 1) * stride + 1),
                (1, 1, stride, stride),
            )  # [N, C, OH, OW]
            slices.append(sl)
    # [KH*KW, N, C, OH, OW] -> [N, OH, OW, C, KH*KW] -> [M, C*KH*KW]
    pat = jnp.stack(slices, axis=0)
    pat = jnp.transpose(pat, (1, 3, 4, 2, 0))
    pat = pat.reshape(n * oh * ow, c * kh * kw)
    return pat, oh, ow


def gated_conv2d(x, wh, bh, wg, bg, *, stride=1, padding=0, dilation=1,
                 activation=None):
    """Equivalent of GatedConv2d.forward.  x: [N, C, H, W] float32 -> NCHW."""
    if activation is not None:
        # TODO(synk): only the module's default activation=None is fused in-kernel.
        raise NotImplementedError("only activation=None is fused in the kernel")

    n, c, h, w = x.shape
    oc, _, kh, kw = wh.shape
    k = c * kh * kw

    patches, oh, ow = _im2col(x, kh, kw, stride, padding, dilation)
    m = n * oh * ow

    # bf16 operands (cast fused into the im2col / reshape copies); the kernel
    # accumulates in f32 and keeps bias + gate math in f32.
    patches = patches.astype(jnp.bfloat16)
    w_fused = jnp.concatenate(
        [wh.reshape(oc, k), wg.reshape(oc, k)], axis=0).T.astype(jnp.bfloat16)
    b_fused = jnp.concatenate([bh, bg]).reshape(1, 2 * oc).astype(jnp.float32)

    tm = _choose_row_tile(m, k, oc)
    out = _gated_matmul(patches, w_fused, b_fused, oc, tm=tm)     # [M, OC] f32

    # [N, OH, OW, OC] -> NCHW to match the PyTorch module's output layout.
    # TODO(synk): skip this transpose (one extra HBM pass) if the consumer accepts NHWC.
    return out.reshape(n, oh, ow, oc).transpose(0, 3, 1, 2)


# --------------------------------------------------------------------------
if __name__ == "__main__":
    key = jax.random.PRNGKey(0)
    N, C, H, W = 2, 4, 16, 16
    OC, KH, KW = 8, 3, 3
    stride, padding, dilation = 1, 1, 1

    k1, k2, k3, k4, k5 = jax.random.split(key, 5)
    x = jax.random.normal(k1, (N, C, H, W), dtype=jnp.float32)
    # PyTorch Conv2d weight shape: [OC, C, KH, KW]; deterministic init.
    fan_in = C * KH * KW
    bound = 1.0 / np.sqrt(fan_in)
    wh = jax.random.uniform(k2, (OC, C, KH, KW), jnp.float32, -bound, bound)
    bh = jax.random.uniform(k3, (OC,), jnp.float32, -bound, bound)
    wg = jax.random.uniform(k4, (OC, C, KH, KW), jnp.float32, -bound, bound)
    bg = jax.random.uniform(k5, (OC,), jnp.float32, -bound, bound)

    out = jax.block_until_ready(
        gated_conv2d(x, wh, bh, wg, bg,
                     stride=stride, padding=padding, dilation=dilation))

    # Reference: identical bf16 operands, f32 accumulation, exact sigmoid.
    dn = lax.conv_dimension_numbers(x.shape, wh.shape, ("NCHW", "OIHW", "NCHW"))
    conv = functools.partial(
        lax.conv_general_dilated,
        window_strides=(stride, stride),
        padding=[(padding, padding), (padding, padding)],
        rhs_dilation=(dilation, dilation),
        dimension_numbers=dn,
        preferred_element_type=jnp.float32,
    )
    xb = x.astype(jnp.bfloat16)
    h_ref = conv(xb, wh.astype(jnp.bfloat16)) + bh[None, :, None, None]
    g_ref = conv(xb, wg.astype(jnp.bfloat16)) + bg[None, :, None, None]
    ref = h_ref * jax.nn.sigmoid(g_ref)

    assert out.shape == (N, OC, H, W), out.shape
    np.testing.assert_allclose(np.asarray(out), np.asarray(ref),
                               rtol=5e-3, atol=5e-3)
    print("KERNEL_OK")
</pallas_src>

<mosaic_0001>
module attributes {stable_mosaic.version = 11 : i64} {
  func.func @_gated_conv_kernel(%arg0: i32, %arg1: memref<128x36xbf16, #tpu.memory_space<vmem>>, %arg2: memref<36x16xbf16, #tpu.memory_space<vmem>>, %arg3: memref<1x16xf32, #tpu.memory_space<vmem>>, %arg4: memref<128x8xf32, #tpu.memory_space<vmem>>) attributes {dimension_semantics = [#tpu.dimension_semantics<parallel>], iteration_bounds = array<i64: 4>, scalar_prefetch = 0 : i64, scratch_operands = 0 : i64, tpu.core_type = #tpu.core_type<tc>, window_params = [{transform_indices = @transform_0, window_bounds = array<i64: 128, 36>}, {pipeline_mode = #tpu.pipeline_mode<synchronous>, transform_indices = @transform_1, window_bounds = array<i64: 36, 16>}, {pipeline_mode = #tpu.pipeline_mode<synchronous>, transform_indices = @transform_2, window_bounds = array<i64: 1, 16>}, {transform_indices = @transform_3, window_bounds = array<i64: 128, 8>}]} {
    %c0 = arith.constant 0 : index
    %c0_0 = arith.constant 0 : index
    %0 = vector.load %arg1[%c0, %c0_0] : memref<128x36xbf16, #tpu.memory_space<vmem>>, vector<128x36xbf16>
    %c0_1 = arith.constant 0 : index
    %c0_2 = arith.constant 0 : index
    %1 = vector.load %arg2[%c0_1, %c0_2] : memref<36x16xbf16, #tpu.memory_space<vmem>>, vector<36x16xbf16>
    %cst = arith.constant dense<0.000000e+00> : vector<128x16xf32>
    %2 = tpu.matmul %0, %1, %cst {dimension_numbers = #tpu.dot_dimension_numbers<[1], [0], [0], [1], [0, 0, 1, 1], [], []>} : vector<128x36xbf16>, vector<36x16xbf16>, vector<128x16xf32> -> vector<128x16xf32>
    %c0_3 = arith.constant 0 : index
    %c0_4 = arith.constant 0 : index
    %3 = vector.load %arg3[%c0_3, %c0_4] : memref<1x16xf32, #tpu.memory_space<vmem>>, vector<1x16xf32>
    %4 = vector.broadcast %3 : vector<1x16xf32> to vector<128x16xf32>
    %5 = arith.addf %2, %4 : vector<128x16xf32>
    %6 = vector.extract_strided_slice %5 {offsets = [0, 0], sizes = [128, 8], strides = [1, 1]} : vector<128x16xf32> to vector<128x8xf32>
    %7 = vector.extract_strided_slice %5 {offsets = [0, 8], sizes = [128, 8], strides = [1, 1]} : vector<128x16xf32> to vector<128x8xf32>
    %cst_5 = arith.constant 0.000000e+00 : f32
    %8 = vector.broadcast %cst_5 : f32 to vector<128x8xf32>
    %9 = arith.subf %8, %7 : vector<128x8xf32>
    %10 = math.exp %9 : vector<128x8xf32>
    %cst_6 = arith.constant 1.000000e+00 : f32
    %11 = vector.broadcast %cst_6 : f32 to vector<128x8xf32>
    %12 = arith.addf %11, %10 : vector<128x8xf32>
    %13 = tpu.reciprocal %12 {approx = true} : vector<128x8xf32> -> vector<128x8xf32>
    %14 = arith.mulf %6, %13 : vector<128x8xf32>
    %c0_7 = arith.constant 0 : index
    %c0_8 = arith.constant 0 : index
    %15 = vector.load %arg4[%c0_7, %c0_8] : memref<128x8xf32, #tpu.memory_space<vmem>>, vector<128x8xf32>
    tpu.vector_store %arg4[%c0_7, %c0_8], %14 {strides = array<i32>} : memref<128x8xf32, #tpu.memory_space<vmem>>, vector<128x8xf32>,
    return
  }
  func.func @transform_0(%arg0: i32) -> (i32, i32) {
    %c0_i32 = arith.constant 0 : i32
    %c0_i32_0 = arith.constant 0 : i32
    return %arg0, %c0_i32 : i32, i32
  }
  func.func @transform_1(%arg0: i32) -> (i32, i32) {
    %c0_i32 = arith.constant 0 : i32
    %c0_i32_0 = arith.constant 0 : i32
    %c0_i32_1 = arith.constant 0 : i32
    return %c0_i32, %c0_i32_0 : i32, i32
  }
  func.func @transform_2(%arg0: i32) -> (i32, i32) {
    %c0_i32 = arith.constant 0 : i32
    %c0_i32_0 = arith.constant 0 : i32
    %c0_i32_1 = arith.constant 0 : i32
    return %c0_i32, %c0_i32_0 : i32, i32
  }
  func.func @transform_3(%arg0: i32) -> (i32, i32) {
    %c0_i32 = arith.constant 0 : i32
    %c0_i32_0 = arith.constant 0 : i32
    return %arg0, %c0_i32 : i32, i32
  }
}

</mosaic_0001>

<bundles_post_ra>
// kernel: tpu_custom_call.1
= control target key start
LH: loop header
LB: loop body
LE: loop exit
PB: predicated region body
PF: predicated region fallthrough
CT: control target
= control target key end

     0   :  { %s802_s12 = smov 0   ;;  %s975_s0 = inlined_call_operand.vmem [shape: bf16[512,36], index: 0, kind: input, shape index: {}]   ;;  %s976_s1 = inlined_call_operand.vmem [shape: bf16[36,16], index: 1, kind: input, shape index: {}]   ;;  %s977_s2 = inlined_call_operand.vmem [shape: f32[1,16], index: 2, kind: input, shape index: {}]   ;;  %s978_s3 = inlined_call_operand.vmem [shape: f32[512,8], index: 3, kind: output, shape index: {}]  }
   0x1 LB: > { %s617_s13 = sadd.s32 4294967295, %s779_s12   ;;  %p621_p0 = scmp.ge.s32.totalorder %s779_s12, 1  ;;  %s779_s12 = sphi %s802_s12, %s13_s12  }
   0x2   : > { %p138_p1 = scmp.lt.s32.totalorder %s779_s12, 5 }
   0x4   : > { %p139_p2 = pnand %p621_p0, %p138_p1 }
   0x5   : > { %v698_v0 = vld [vmem:[%s976_s1] sm:$0xff] (!%p139_p2)   ;;  %v699_v1 = vld [vmem:[%s976_s1 + $0x8] sm:$0xff] (!%p139_p2)   ;;  %s622_s18 = sshll.u32 (!%p139_p2), %s617_s13, 4  ;;  %v700_v2 = vld [vmem:[%s976_s1 + $0x10] ss:$0 sps:$4 sm:$0x33] (!%p139_p2)  }
   0x6   : > { %142 = sbr.rel (%p139_p2) target bundleno = 408 (0x198), region = 32  ;;  %659 = vmatprep.subr.bf16.mxu0 (!%p139_p2), %v698_v0  ;;  %681 = vmatprep.subr.bf16.mxu1 (!%p139_p2), %v698_v0  ;;  %p163_p3 = scmp.lt.s32.totalorder (!%p139_p2), %s622_s18, 63  ;;  %vm283_vm0 = vcmask (!%p139_p2), 1041408   ;;  %vm258_vm1 = vcmask (!%p139_p2), 293888   ;;  %v836_v12 = vld [vmem:[%s977_s2] ss:$0 sm:$0xff] (!%p139_p2) }
   0x7   : > { %660 = vmatpush3.bf16.msra.mxu0 (!%p139_p2), %v698_v0  ;;  %684 = vmatpush3.bf16.msra.mxu1 (!%p139_p2), %v698_v0  ;;  %v285_v3 = vsel (!%p139_p2), %vm283_vm0, %v700_v2, 0  ;;  %s781_s27 = smov (!%p139_p2), 120   ;;  %vm544_vm2 = vcmask (!%p139_p2), 64512  }
   0x8   : > { %661 = vmatprep.subr.bf16.mxu0 (!%p139_p2), %v699_v1  ;;  %682 = vmatprep.subr.bf16.mxu1 (!%p139_p2), %v699_v1 }
   0xb   : > { %662 = vmatpush3.bf16.msra.mxu0 (!%p139_p2), %v699_v1  ;;  %685 = vmatpush3.bf16.msra.mxu1 (!%p139_p2), %v699_v1 }
   0xc   : > { %687 = vmatprep.subr.msk.bf16.mxu0 (!%p139_p2), %vm283_vm0, %v700_v2  ;;  %688 = vmatprep.subr.msk.bf16.mxu1 (!%p139_p2), %vm283_vm0, %v700_v2 }
   0xd   : > { %s980_s18 = smov (!%p163_p3, %s622_s18), 63 }
   0xe   : > { %s623_s21 = sshll.u32 %s980_s18, 2  ;;  %s625_s28 = sshll.u32 %s980_s18, 3 }
   0xf   : > { %s166_s24 = scalar_lea.vmem %s975_s0, %s623_s21  ;;  %664 = vmatpush3.bf16.msra.mxu0 %v285_v3  ;;  %686 = vmatpush3.bf16.msra.mxu1 %v285_v3  ;;  %s922_s4 = scalar_lea.vmem %s978_s3, %s625_s28 }
  0x10   : > { %v701_v4 = vld [vmem:[%s166_s24] sm:$0xff]   ;;  %v703_v6 = vld [vmem:[%s166_s24 + $0x8] sm:$0xff]   ;;  %v705_v8 = vld [vmem:[%s166_s24 + $0x10] sm:$0xff]  }
  0x11   : > { %v702_v5 = vld [vmem:[%s166_s24 + $0x20] sm:$0xff]   ;;  %665 = vmatprep.mubr.msk.bf16.mxu0 %vm258_vm1, %v701_v4  ;;  %v704_v7 = vld [vmem:[%s166_s24 + $0x28] sm:$0xff]   ;;  %v707_v9 = vld [vmem:[%s166_s24 + $0x30] sm:$0xff]  }
  0x12   : > { %673 = vmatprep.mubr.msk.bf16.mxu1 %vm258_vm1, %v702_v5  ;;  %666 = vmatmul.mubr.msk.bf16.vlgmr.msra.gmra.mrb[0].mxu0 %vm258_vm1, %v703_v6  ;;  %v706_v10 = vld [vmem:[%s166_s24 + $0x18] sm:$0xff]  }
  0x13   : > { %674 = vmatmul.mubr.msk.bf16.vlgmr.msra.gmra.mrb[0].mxu1 %vm258_vm1, %v704_v7  ;;  %669 = vmatprep.mubr.msk.bf16.mxu0 %vm258_vm1, %v705_v8  ;;  %v708_v11 = vld [vmem:[%s166_s24 + $0x38] sm:$0xff]  }
  0x14   : > { %677 = vmatprep.mubr.msk.bf16.mxu1 %vm258_vm1, %v707_v9 }
  0x1a   : > { %670 = vmatmul.mubr.msk.bf16.gmra.mrb[4].mxu0 %vm258_vm1, %v706_v10 }
  0x1b   : > { %678 = vmatmul.mubr.msk.bf16.gmra.mrb[4].mxu1 %vm258_vm1, %v708_v11 }
  0xe5   : > { %v667_v13 = vpop.f32.mrb[0].mxu0 }
  0xe6   : > { %v675_v14 = vpop.f32.mrb[0].mxu1  ;;  %v839_v15 = vadd.f32 %v667_v13, %v836_v12  ;;  %v321_v17 = vpop.f32.mrb[1].mxu0 }
  0xe7   : > { %v842_v16 = vadd.f32 %v675_v14, %v836_v12  ;;  %v353_v18 = vpop.f32.mrb[1].mxu1  ;;  %v845_v19 = vadd.f32 %v836_v12, %v321_v17  ;;  %v668_v21 = vpop.f32.mrb[2].mxu0 }
  0xe8   : > { %v848_v20 = vadd.f32 %v836_v12, %v353_v18  ;;  %v676_v22 = vpop.f32.mrb[2].mxu1  ;;  %v386_v23 = vsub.f32 0.0, %v839_v15  ;;  %v853_v25 = vadd.f32 %v668_v21, %v836_v12  ;;  %v324_v27 = vpop.f32.mrb[3].mxu0 }
  0xe9   : > { %v394_v24 = vsub.f32 0.0, %v842_v16  ;;  %v856_v26 = vadd.f32 %v676_v22, %v836_v12  ;;  %v356_v28 = vpop.f32.mrb[3].mxu1  ;;  %v384_v29 = vsub.f32 0.0, %v845_v19  ;;  %v861_v31 = vadd.f32 %v836_v12, %v324_v27 }
  0xea   : > { %v392_v30 = vsub.f32 0.0, %v848_v20  ;;  %v864_v32 = vadd.f32 %v836_v12, %v356_v28  ;;  %v404_v33 = vmul.f32 1.442695, %v386_v23  ;;  %v387_v35 = vsub.f32 0.0, %v853_v25 }
  0xeb   : > { %v420_v34 = vmul.f32 1.442695, %v394_v24  ;;  %v395_v36 = vsub.f32 0.0, %v856_v26  ;;  %v400_v37 = vmul.f32 1.442695, %v384_v29  ;;  %v385_v39 = vsub.f32 0.0, %v861_v31 }
  0xec   : > { %v416_v38 = vmul.f32 1.442695, %v392_v30  ;;  %709 = vpow2.f32 %v404_v33  ;;  %v406_v40 = vmul.f32 1.442695, %v387_v35  ;;  %v393_v41 = vsub.f32 0.0, %v864_v32 }
  0xed   : > { %711 = vpow2.f32 %v420_v34  ;;  %v422_v42 = vmul.f32 1.442695, %v395_v36  ;;  %v671_v43 = vpop.f32.mrb[4].mxu0  ;;  %v402_v48 = vmul.f32 1.442695, %v385_v39 }
  0xee   : > { %v679_v44 = vpop.f32.mrb[4].mxu1  ;;  %713 = vpow2.f32 %v400_v37  ;;  %v871_v45 = vadd.f32 %v671_v43, %v836_v12  ;;  %v337_v46 = vpop.f32.mrb[5].mxu0  ;;  %v418_v52 = vmul.f32 1.442695, %v393_v41 }
  0xef   : > { %v369_v47 = vpop.f32.mrb[5].mxu1  ;;  %715 = vpow2.f32 %v416_v38  ;;  %v874_v49 = vadd.f32 %v836_v12, %v337_v46  ;;  %v672_v50 = vpop.f32.mrb[6].mxu0  ;;  %v887_v3 = vadd.f32 %v679_v44, %v836_v12 }
  0xf0   : > { %v680_v51 = vpop.f32.mrb[6].mxu1  ;;  %717 = vpow2.f32 %v406_v40  ;;  %v390_v53 = vsub.f32 0.0, %v871_v45  ;;  %v878_v54 = vadd.f32 %v672_v50, %v836_v12  ;;  %v340_v55 = vpop.f32.mrb[7].mxu0  ;;  %v890_v10 = vadd.f32 %v836_v12, %v369_v47 }
  0xf1   : > { %v372_v56 = vpop.f32.mrb[7].mxu1  ;;  %719 = vpow2.f32 %v422_v42  ;;  %v881_v57 = vadd.f32 %v836_v12, %v340_v55  ;;  %v388_v60 = vsub.f32 0.0, %v874_v49  ;;  %v398_v14 = vsub.f32 0.0, %v887_v3 }
  0xf2   : > { %v391_v58 = vsub.f32 0.0, %v878_v54  ;;  %721 = vpow2.f32 %v402_v48  ;;  %v412_v59 = vmul.f32 1.442695, %v390_v53  ;;  %v894_v17 = vadd.f32 %v680_v51, %v836_v12 }
  0xf3   : > { %723 = vpow2.f32 %v418_v52  ;;  %v389_v62 = vsub.f32 0.0, %v881_v57  ;;  %v408_v2 = vmul.f32 1.442695, %v388_v60  ;;  %v897_v18 = vadd.f32 %v836_v12, %v372_v56 }
  0xf4   : > { %v414_v61 = vmul.f32 1.442695, %v391_v58  ;;  %725 = vpow2.f32 %v412_v59  ;;  %v396_v27 = vsub.f32 0.0, %v890_v10  ;;  %v428_v28 = vmul.f32 1.442695, %v398_v14 }
  0xf5   : > { %v410_v6 = vmul.f32 1.442695, %v389_v62  ;;  %v399_v29 = vsub.f32 0.0, %v894_v17  ;;  %v397_v33 = vsub.f32 0.0, %v897_v18 }
  0xf6   : > { %v710_v63 = vpop.eup %709  ;;  %727 = vpow2.f32 %v414_v61  ;;  %v424_v12 = vmul.f32 1.442695, %v396_v27 }
  0xf7   : > { %v712_v0 = vpop.eup %711  ;;  %v434_v1 = vadd.f32 1.0, %v710_v63  ;;  %v430_v38 = vmul.f32 1.442695, %v399_v29  ;;  %v426_v40 = vmul.f32 1.442695, %v397_v33 }
  0xf8   : > { %v714_v4 = vpop.eup %713  ;;  %v442_v5 = vadd.f32 1.0, %v712_v0 }
  0xf9   : > { %v716_v7 = vpop.eup %715  ;;  %729 = vrcp.f32 %v434_v1  ;;  %v432_v9 = vadd.f32 1.0, %v714_v4 }
  0xfa   : > { %v718_v8 = vpop.eup %717  ;;  %731 = vrcp.f32 %v442_v5  ;;  %v440_v24 = vadd.f32 1.0, %v716_v7 }
  0xfb   : > { %v720_v11 = vpop.eup %719  ;;  %v435_v13 = vadd.f32 1.0, %v718_v8  ;;  %733 = vpow2.f32 %v408_v2 }
  0xfc   : > { %735 = vpow2.f32 %v410_v6  ;;  %v722_v21 = vpop.eup %721  ;;  %v443_v22 = vadd.f32 1.0, %v720_v11 }
  0xfd   : > { %737 = vrcp.f32 %v435_v13  ;;  %v724_v23 = vpop.eup %723  ;;  %v433_v30 = vadd.f32 1.0, %v722_v21 }
  0xfe   : > { %739 = vrcp.f32 %v432_v9  ;;  %v726_v34 = vpop.eup %725  ;;  %v441_v35 = vadd.f32 1.0, %v724_v23 }
  0xff   : > { %741 = vrcp.f32 %v443_v22  ;;  %v438_v44 = vadd.f32 1.0, %v726_v34 }
 0x100   : > { %v728_v36 = vpop.eup %727  ;;  %743 = vrcp.f32 %v440_v24 }
 0x101   : > { %745 = vpow2.f32 %v428_v28  ;;  %v439_v42 = vadd.f32 1.0, %v728_v36 }
 0x102   : > { %747 = vrcp.f32 %v433_v30 }
 0x103   : > { %v730_v37 = vpop.eup %729  ;;  %749 = vrcp.f32 %v441_v35 }
 0x104   : > { %v732_v39 = vpop.eup %731  ;;  %484 = vrot.lane.b32.xlu1 %v730_v37, %s781_s27  ;;  %751 = vpow2.f32 %v424_v12 }
 0x105   : > { %v734_v41 = vpop.eup %733  ;;  %500 = vrot.lane.b32.xlu0 %v732_v39, %s781_s27  ;;  %753 = vpow2.f32 %v430_v38 }
 0x106   : > { %v736_v43 = vpop.eup %735  ;;  %755 = vpow2.f32 %v426_v40  ;;  %v436_v50 = vadd.f32 1.0, %v734_v41 }
 0x107   : > { %v738_v46 = vpop.eup %737  ;;  %757 = vrcp.f32 %v439_v42  ;;  %v437_v48 = vadd.f32 1.0, %v736_v43 }
 0x108   : > { %v740_v47 = vpop.eup %739  ;;  %486 = vrot.lane.b32.xlu1 %v738_v46, %s781_s27  ;;  %759 = vrcp.f32 %v438_v44 }
 0x109   : > { %480 = vrot.lane.b32.xlu0 %v740_v47, %s781_s27  ;;  %v742_v51 = vpop.eup %741  ;;  %761 = vrcp.f32 %v437_v48 }
 0x10a   : > { %v744_v52 = vpop.eup %743  ;;  %763 = vrcp.f32 %v436_v50 }
 0x10b   : > { %v746_v53 = vpop.eup %745 }
 0x10c   : > { %502 = vrot.lane.b32.xlu1 %v742_v51, %s781_s27  ;;  %v748_v55 = vpop.eup %747  ;;  %v446_v63 = vadd.f32 1.0, %v746_v53 }
 0x10d   : > { %496 = vrot.lane.b32.xlu0 %v744_v52, %s781_s27  ;;  %v750_v56 = vpop.eup %749 }
 0x10e   : > { %v752_v58 = vpop.eup %751 }
 0x10f   : > { %v754_v59 = vpop.eup %753  ;;  %v444_v60 = vadd.f32 1.0, %v752_v58 }
 0x110   : > { %498 = vrot.lane.b32.xlu1 %v750_v56, %s781_s27  ;;  %v756_v61 = vpop.eup %755  ;;  %v447_v2 = vadd.f32 1.0, %v754_v59 }
 0x111   : > { %482 = vrot.lane.b32.xlu0 %v748_v55, %s781_s27  ;;  %v758_v62 = vpop.eup %757  ;;  %765 = vrcp.f32 %v444_v60  ;;  %v445_v0 = vadd.f32 1.0, %v756_v61 }
 0x112   : > { %v760_v1 = vpop.eup %759 }
 0x113   : > { %767 = vrcp.f32 %v445_v0  ;;  %v762_v4 = vpop.eup %761 }
 0x114   : > { %494 = vrot.lane.b32.xlu1 %v758_v62, %s781_s27  ;;  %769 = vrcp.f32 %v446_v63  ;;  %v764_v5 = vpop.eup %763 }
 0x115   : > { %492 = vrot.lane.b32.xlu0 %v760_v1, %s781_s27  ;;  %771 = vrcp.f32 %v447_v2 }
 0x118   : > { %490 = vrot.lane.b32.xlu1 %v762_v4, %s781_s27 }
 0x119   : > { %488 = vrot.lane.b32.xlu0 %v764_v5, %s781_s27 }
 0x11b   : > { %v766_v6 = vpop.eup %765 }
 0x11d   : > { %504 = vrot.lane.b32.xlu0 %v766_v6, %s781_s27  ;;  %v768_v7 = vpop.eup %767 }
 0x11e   : > { %506 = vrot.lane.b32.xlu1 %v768_v7, %s781_s27  ;;  %v770_v8 = vpop.eup %769 }
 0x11f   : > { %v772_v9 = vpop.eup %771 }
 0x121   : > { %508 = vrot.lane.b32.xlu0 %v770_v8, %s781_s27 }
 0x122   : > { %510 = vrot.lane.b32.xlu1 %v772_v9, %s781_s27 }
 0x176   : > { %v485_v11 = vpop.permute.xlu1 %484 }
 0x177   : > { %v501_v13 = vpop.permute.xlu0 %500  ;;  %v530_v14 = vmul.f32 %v485_v11, %v839_v15 }
 0x178   : > { %v538_v21 = vmul.f32 %v501_v13, %v842_v16 }
 0x179   : > { %547 = vst.msk [vmem:[%s922_s4 + $0x10] sm:$0xff] %vm544_vm2, %v530_v14 }
 0x17a   : > { %555 = vst.msk [vmem:[%s922_s4 + $0x50] sm:$0xff] %vm544_vm2, %v538_v21  ;;  %v487_v22 = vpop.permute.xlu1 %486 }
 0x17b   : > { %v531_v23 = vmul.f32 %v487_v22, %v853_v25  ;;  %v481_v24 = vpop.permute.xlu0 %480 }
 0x17c   : > { %v528_v27 = vmul.f32 %v481_v24, %v845_v19 }
 0x17d   : > { %548 = vst.msk [vmem:[%s922_s4 + $0x18] sm:$0xff] %vm544_vm2, %v531_v23 }
 0x17e   : > { %545 = vst.msk [vmem:[%s922_s4] sm:$0xff] %vm544_vm2, %v528_v27  ;;  %v503_v28 = vpop.permute.xlu1 %502 }
 0x17f   : > { %v539_v15 = vmul.f32 %v503_v28, %v856_v26  ;;  %v497_v16 = vpop.permute.xlu0 %496 }
 0x180   : > { %v536_v29 = vmul.f32 %v497_v16, %v848_v20 }
 0x181   : > { %556 = vst.msk [vmem:[%s922_s4 + $0x58] sm:$0xff] %vm544_vm2, %v539_v15 }
 0x182   : > { %553 = vst.msk [vmem:[%s922_s4 + $0x40] sm:$0xff] %vm544_vm2, %v536_v29  ;;  %v499_v25 = vpop.permute.xlu1 %498 }
 0x183   : > { %v537_v19 = vmul.f32 %v499_v25, %v864_v32  ;;  %v483_v30 = vpop.permute.xlu0 %482 }
 0x184   : > { %v529_v33 = vmul.f32 %v483_v30, %v861_v31 }
 0x185   : > { %554 = vst.msk [vmem:[%s922_s4 + $0x48] sm:$0xff] %vm544_vm2, %v537_v19 }
 0x186   : > { %546 = vst.msk [vmem:[%s922_s4 + $0x8] sm:$0xff] %vm544_vm2, %v529_v33  ;;  %v495_v26 = vpop.permute.xlu1 %494 }
 0x187   : > { %v535_v20 = vmul.f32 %v495_v26, %v878_v54  ;;  %v493_v34 = vpop.permute.xlu0 %492 }
 0x188   : > { %v534_v35 = vmul.f32 %v493_v34, %v871_v45 }
 0x189   : > { %552 = vst.msk [vmem:[%s922_s4 + $0x38] sm:$0xff] %vm544_vm2, %v535_v20 }
 0x18a   : > { %551 = vst.msk [vmem:[%s922_s4 + $0x30] sm:$0xff] %vm544_vm2, %v534_v35  ;;  %v491_v32 = vpop.permute.xlu1 %490 }
 0x18b   : > { %v533_v31 = vmul.f32 %v491_v32, %v881_v57  ;;  %v489_v36 = vpop.permute.xlu0 %488 }
 0x18c   : > { %v532_v12 = vmul.f32 %v489_v36, %v874_v49 }
 0x18d   : > { %550 = vst.msk [vmem:[%s922_s4 + $0x28] sm:$0xff] %vm544_vm2, %v533_v31 }
 0x18e   : > { %549 = vst.msk [vmem:[%s922_s4 + $0x20] sm:$0xff] %vm544_vm2, %v532_v12 }
 0x18f   : > { %v505_v54 = vpop.permute.xlu0 %504 }
 0x190   : > { %v540_v37 = vmul.f32 %v505_v54, %v890_v10  ;;  %v507_v45 = vpop.permute.xlu1 %506 }
 0x191   : > { %v541_v38 = vmul.f32 %v507_v45, %v897_v18 }
 0x192   : > { %557 = vst.msk [vmem:[%s922_s4 + $0x60] sm:$0xff] %vm544_vm2, %v540_v37 }
 0x193   : > { %v509_v39 = vpop.permute.xlu0 %508  ;;  %558 = vst.msk [vmem:[%s922_s4 + $0x68] sm:$0xff] %vm544_vm2, %v541_v38 }
 0x194   : > { %v542_v57 = vmul.f32 %v509_v39, %v887_v3  ;;  %v511_v40 = vpop.permute.xlu1 %510 }
 0x195   : > { %v543_v49 = vmul.f32 %v511_v40, %v894_v17 }
 0x196   : > { %559 = vst.msk [vmem:[%s922_s4 + $0x70] sm:$0xff] %vm544_vm2, %v542_v57 }
 0x197   : > { %560 = vst.msk [vmem:[%s922_s4 + $0x78] sm:$0xff] %vm544_vm2, %v543_v49 }
 0x198 PF: > { %s13_s12 = sadd.s32 1, %s779_s12  }
 0x199   : > { %p10_p4 = scmp.ge.s32.totalorder %s13_s12, 6  }
 0x19b   :  { %12 = sbr.rel (!%p10_p4) target bundleno = 1 (0x1), region = 62 }

</bundles_post_ra>
